<compile_context>
chip_gen: v7x
topology: tpu7x:2x2x1
jax: 0.10.0
libtpu: 0.0.40
codegen_flags: <defaults>
</compile_context>

<pallas_src>
import functools

import jax
import jax.numpy as jnp
from jax.experimental import pallas as pl
from jax.experimental.pallas import tpu as pltpu


# ----------------------------- fused Pallas kernel ---------------------------


def _fused_gnn_kernel(a_ref, r0_ref, w1_ref, b1_ref, w2_ref, b2_ref,
                      wc_ref, bc_ref, out_ref,
                      acc_ref, h1_ref, colsum_ref,
                      *, tile_n, r0_pad, apply_w1, n_valid, inv_n):
    """Grid = (layer, i, k); layer outermost so layer 1 finishes before layer 2.

    layer 0:  acc[i] += A[i,k] @ R0[k]          (k-reduction, R0 VMEM-resident)
              at last k: h1[i] = relu(acc @ W1 + b1)   (or relu(acc + b1) if
              W1 was already folded into R0 = X @ W1)  -> VMEM scratch
    layer 1:  acc[i] += A[i,k] @ h1[k]          (k-reduction)
              at last k: colsum += sum_rows(acc @ W2)
              at last (i,k): out = sigmoid((colsum/N + b2) . wc + bc)
    """
    layer = pl.program_id(0)
    i = pl.program_id(1)
    k = pl.program_id(2)
    n_i = pl.num_programs(1)
    n_k = pl.num_programs(2)
    last_k = k == n_k - 1

    # Layer-0 accumulator view: only the leading r0_pad lanes are used when the
    # layer-0 RHS is narrower than h_pad (static decision).
    if r0_pad == acc_ref.shape[-1]:
        acc0 = acc_ref
    else:
        acc0 = acc_ref.at[:, :r0_pad]

    @pl.when(k == 0)
    def _zero_acc():
        acc_ref[...] = jnp.zeros_like(acc_ref)

    @pl.when(jnp.logical_and(layer == 1, jnp.logical_and(i == 0, k == 0)))
    def _zero_colsum():
        colsum_ref[...] = jnp.zeros_like(colsum_ref)

    a_tile = a_ref[...]                                   # (tile_n, tile_n) bf16
    k_off = pl.multiple_of(k * tile_n, tile_n)

    @pl.when(layer == 0)
    def _aggregate_layer0():
        # R0 is VMEM-resident (constant block index): one HBM fetch total.
        r0_rows = r0_ref[pl.ds(k_off, tile_n), :]          # (tile_n, r0_pad) bf16
        acc0[...] += jnp.dot(a_tile, r0_rows,
                             preferred_element_type=jnp.float32)

    @pl.when(layer == 1)
    def _aggregate_layer1():
        h_rows = h1_ref[pl.ds(k_off, tile_n), :]           # bf16, stays in VMEM
        acc_ref[...] += jnp.dot(a_tile, h_rows,
                                preferred_element_type=jnp.float32)

    @pl.when(jnp.logical_and(last_k, layer == 0))
    def _finish_layer0():
        agg = acc0[...]
        if apply_w1:
            # aggregate-first ordering: (A @ X) @ W1 on the bf16 MXU path,
            # f32 accumulation.
            h1 = jnp.dot(agg.astype(w1_ref.dtype), w1_ref[...],
                         preferred_element_type=jnp.float32)
        else:
            # transform-first ordering: W1 was folded into R0 = X @ W1.
            h1 = agg
        h1 = jnp.maximum(h1 + b1_ref[...], 0.0)
        # F.dropout in eval mode == identity.
        i_off = pl.multiple_of(i * tile_n, tile_n)
        # Zero padded node rows so h1 never carries relu(b1) for fake nodes.
        row_ids = i_off + jax.lax.broadcasted_iota(jnp.int32, (tile_n, 1), 0)
        h1 = jnp.where(row_ids < n_valid, h1, 0.0)
        h1_ref[pl.ds(i_off, tile_n), :] = h1.astype(h1_ref.dtype)

    @pl.when(jnp.logical_and(last_k, layer == 1))
    def _finish_layer1():
        # bf16 MXU epilogue, f32 accumulation.
        h2 = jnp.dot(acc_ref[...].astype(w2_ref.dtype), w2_ref[...],
                     preferred_element_type=jnp.float32)
        # Padded node rows of A are zero -> their acc / h2 rows are zero, so
        # summing all rows == summing valid rows.  b2 is added once in the head.
        colsum_ref[...] += jnp.sum(h2, axis=0, keepdims=True)

    @pl.when(jnp.logical_and(jnp.logical_and(last_k, layer == 1),
                             i == n_i - 1))
    def _head():
        mean = colsum_ref[...] * inv_n + b2_ref[...]              # (1, h_pad)
        # Classifier (1,H)x(H,1): VPU multiply + lane reduce, no extra MXU pass.
        logit = jnp.sum(mean * wc_ref[...], axis=-1, keepdims=True) + bc_ref[...]
        out_ref[...] = jax.nn.sigmoid(logit).astype(out_ref.dtype)


# ------------------------------- host wrapper ---------------------------------


def _round_up(v, m):
    return (v + m - 1) // m * m


def _vmem_capacity_bytes():
    """Per-TensorCore VMEM capacity; conservative fallback if unavailable."""
    try:
        return int(pltpu.get_tpu_info().vmem_capacity_bytes)
    except Exception:
        return 64 << 20        # v7x per-TC size == safe lower bound for all gens


def build_norm_adj_padded(edge_index, num_nodes, n_pad, dtype):
    """GCN-normalized aggregation matrix, built directly at padded size.

    M[i, j] = deg^-1/2[i] * (A + I)[j, i] * deg^-1/2[j],
    deg[i] = in-degree of i incl. self loop (PyG gcn_norm).
    Padded rows/cols stay exactly zero (deg = 0 -> dinv = 0).
    Duplicate edges accumulate weight > 1 (PyG GCNConv default behavior).
    """
    src = edge_index[0]
    dst = edge_index[1]
    a_hat_t = jnp.zeros((n_pad, n_pad), jnp.float32)
    a_hat_t = a_hat_t.at[dst, src].add(1.0)                 # transposed adjacency
    diag = jnp.arange(num_nodes)
    a_hat_t = a_hat_t.at[diag, diag].add(1.0)               # self loops, no jnp.eye
    deg = a_hat_t.sum(axis=1)                               # in-degree incl. loop
    dinv = jnp.where(deg > 0, jax.lax.rsqrt(deg), 0.0)
    return (dinv[:, None] * a_hat_t * dinv[None, :]).astype(dtype)


def fraud_gnn_forward(x, edge_index, w1, b1, w2, b2, wc, bc):
    """Whole FraudGNN forward in one pallas_call.  Returns shape (1,)."""
    mxu_dtype = jnp.bfloat16            # TODO(synk): fp8 e4m3 for A on v7x.
    n, f = x.shape
    h = w1.shape[1]

    # Separate lane-dense paddings for F and H.
    f_pad = _round_up(f, 128)
    h_pad = _round_up(h, 128)

    # Node tiling: per-step pipeline overhead (~0.35us) dominates small tiles,
    # so use the largest aligned tile up to 512; 128 only for tiny graphs.
    n128 = _round_up(n, 128)
    tile_n = min(512, n128)
    n_pad = _round_up(n, tile_n)
    n_tiles = n_pad // tile_n

    # Layer-1 ordering: put the narrower operand on the N^2 contraction RHS.
    aggregate_first = f_pad <= h_pad
    r0_pad = f_pad if aggregate_first else h_pad

    # ----- operands (zero padding is mathematically inert) -----
    a_p = build_norm_adj_padded(edge_index, n, n_pad, mxu_dtype)

    if aggregate_first:
        # R0 = X; W1 applied in the layer-0 epilogue.
        r0 = jnp.zeros((n_pad, r0_pad), mxu_dtype).at[:n, :f].set(
            x.astype(mxu_dtype))
        w1_p = jnp.zeros((f_pad, h_pad), mxu_dtype).at[:f, :h].set(
            w1.astype(mxu_dtype))
    else:
        # Transform-first: fold W1 into R0 = X @ W1 (tiny f32 prologue matmul),
        # so the N^2 contraction RHS is h_pad wide instead of f_pad.
        xw1 = jnp.dot(x.astype(jnp.float32), w1,
                      preferred_element_type=jnp.float32)
        r0 = jnp.zeros((n_pad, r0_pad), mxu_dtype).at[:n, :h].set(
            xw1.astype(mxu_dtype))
        w1_p = jnp.zeros((8, 128), mxu_dtype)     # unused placeholder block

    w2_p = jnp.zeros((h_pad, h_pad), mxu_dtype).at[:h, :h].set(
        w2.astype(mxu_dtype))
    b1_p = jnp.zeros((1, h_pad), jnp.float32).at[0, :h].set(b1)
    b2_p = jnp.zeros((1, h_pad), jnp.float32).at[0, :h].set(b2)
    wc_p = jnp.zeros((1, h_pad), jnp.float32).at[0, :h].set(wc.reshape(-1))
    bc_p = bc.reshape(1, 1).astype(jnp.float32)

    # ----- generation-aware VMEM budgeting -----
    bsz = jnp.dtype(mxu_dtype).itemsize
    h1_bytes = n_pad * h_pad * bsz                  # resident h1 scratch
    r0_bytes = n_pad * r0_pad * bsz                 # resident R0 input block
    w_bytes = (w1_p.size + w2_p.size) * bsz
    est = (h1_bytes
           + 2 * r0_bytes                           # R0 (double-buffered input)
           + 2 * tile_n * tile_n * bsz              # A tile, double-buffered
           + tile_n * h_pad * 4                     # f32 accumulator
           + 2 * w_bytes                            # W1/W2, double-buffered
           + 16 * h_pad * 4                         # biases / wc / colsum
           + (2 << 20))                             # compiler-internal headroom
    vmem_cap = _vmem_capacity_bytes()               # 64 MiB v7x, 128 MiB v5e/v6e
    if est > vmem_cap - (8 << 20):
        # TODO(synk): stream h1 / X through HBM (or use sparse CSR aggregation)
        # for graphs whose resident activations exceed this generation's VMEM.
        raise ValueError("graph too large for VMEM-resident h1/X scratch")
    vmem_limit = int(min(max(est + est // 2, 32 << 20), vmem_cap - (4 << 20)))

    grid_spec = pltpu.PrefetchScalarGridSpec(
        num_scalar_prefetch=0,
        grid=(2, n_tiles, n_tiles),   # (layer, node row tile, contraction tile)
        # NOTE: constant-index blocks (R0, weights, biases) are fetched once and
        # never re-DMA'd; a pipeline_mode=pl.Buffered sweep (3 on A, 1 on the
        # constants) is a further few-percent / VMEM tweak left for tuning.
        in_specs=[
            pl.BlockSpec((tile_n, tile_n), lambda l, i, k: (i, k)),     # A
            pl.BlockSpec((n_pad, r0_pad), lambda l, i, k: (0, 0)),      # R0 (resident)
            pl.BlockSpec(w1_p.shape, lambda l, i, k: (0, 0)),           # W1 (or dummy)
            pl.BlockSpec((1, h_pad), lambda l, i, k: (0, 0)),           # b1
            pl.BlockSpec((h_pad, h_pad), lambda l, i, k: (0, 0)),       # W2
            pl.BlockSpec((1, h_pad), lambda l, i, k: (0, 0)),           # b2
            pl.BlockSpec((1, h_pad), lambda l, i, k: (0, 0)),           # wc
            pl.BlockSpec((1, 1), lambda l, i, k: (0, 0)),               # bc
        ],
        out_specs=pl.BlockSpec((1, 1), lambda l, i, k: (0, 0)),
        scratch_shapes=[
            pltpu.VMEM((tile_n, h_pad), jnp.float32),   # shared f32 accumulator
            pltpu.VMEM((n_pad, h_pad), mxu_dtype),      # resident h1
            pltpu.VMEM((1, h_pad), jnp.float32),        # running column sum
        ],
    )

    out = pl.pallas_call(
        functools.partial(_fused_gnn_kernel,
                          tile_n=tile_n, r0_pad=r0_pad,
                          apply_w1=aggregate_first,
                          n_valid=n, inv_n=1.0 / n),
        out_shape=jax.ShapeDtypeStruct((1, 1), jnp.float32),
        grid_spec=grid_spec,
        compiler_params=pltpu.CompilerParams(
            # layer is sequential; i carries the colsum accumulator and writes
            # the shared h1 scratch; k is the reduction -> all arbitrary.
            # TODO(synk): v7x 2-TensorCore split needs a core_map restructure
            # (per-core colsum partials + h1 halves exchange); i cannot simply
            # be flipped to "parallel".
            dimension_semantics=("arbitrary", "arbitrary", "arbitrary"),
            vmem_limit_bytes=vmem_limit),
    )(a_p, r0, w1_p, b1_p, w2_p, b2_p, wc_p, bc_p)
    return out.reshape(1)


_fraud_gnn_forward_jit = jax.jit(fraud_gnn_forward)


# ------------------------------- model wrapper --------------------------------


class FraudGNNPallas:
    """Deterministically-initialized parameters + fused Pallas forward."""

    def __init__(self, num_node_features, hidden_channels, key):
        k1, k2, k3 = jax.random.split(key, 3)
        s1 = 1.0 / jnp.sqrt(jnp.float32(num_node_features))
        s2 = 1.0 / jnp.sqrt(jnp.float32(hidden_channels))
        self.w1 = jax.random.normal(k1, (num_node_features, hidden_channels),
                                    jnp.float32) * s1
        self.b1 = jnp.zeros((hidden_channels,), jnp.float32)
        self.w2 = jax.random.normal(k2, (hidden_channels, hidden_channels),
                                    jnp.float32) * s2
        self.b2 = jnp.zeros((hidden_channels,), jnp.float32)
        self.wc = jax.random.normal(k3, (hidden_channels, 1), jnp.float32) * s2
        self.bc = jnp.zeros((1,), jnp.float32)

    def __call__(self, x, edge_index):
        return _fraud_gnn_forward_jit(x, edge_index, self.w1, self.b1,
                                      self.w2, self.b2, self.wc, self.bc)


# ---------------------------------- main ---------------------------------------

if __name__ == "__main__":
    key = jax.random.PRNGKey(0)
    k_x, k_e, k_p = jax.random.split(key, 3)

    num_nodes = 8
    num_node_features = 16
    hidden_channels = 32
    num_edges = 16

    x = jax.random.normal(k_x, (num_nodes, num_node_features), jnp.float32)
    edge_index = jax.random.randint(k_e, (2, num_edges), 0, num_nodes,
                                    dtype=jnp.int32)

    model = FraudGNNPallas(num_node_features, hidden_channels, k_p)
    out = model(x, edge_index)
    out = jax.block_until_ready(out)

    assert out.shape == (1,)
    assert bool(jnp.all((out >= 0.0) & (out <= 1.0)))
    print("KERNEL_OK")
</pallas_src>

<mosaic_0001>
module attributes {stable_mosaic.version = 11 : i64} {
  func.func private @main(%arg0: i32) attributes {dimension_semantics = [#tpu.dimension_semantics<core_parallel>], iteration_bounds = array<i64: 2>, tpu.core_type = #tpu.core_type<sc_scalar_subcore>, window_params = []} {
    return
  }
}

module attributes {stable_mosaic.version = 11 : i64} {
  func.func private @main(%arg0: i32) attributes {dimension_semantics = [#tpu.dimension_semantics<core_parallel>], iteration_bounds = array<i64: 2>, tpu.core_type = #tpu.core_type<sc_scalar_subcore>, window_params = []} {
    return
  }
}

module attributes {stable_mosaic.version = 11 : i64} {
  func.func @_fused_gnn_kernel(%arg0: i32, %arg1: i32, %arg2: i32, %arg3: memref<128x128xbf16, #tpu.memory_space<vmem>>, %arg4: memref<128x128xbf16, #tpu.memory_space<vmem>>, %arg5: memref<128x128xbf16, #tpu.memory_space<vmem>>, %arg6: memref<1x128xf32, #tpu.memory_space<vmem>>, %arg7: memref<128x128xbf16, #tpu.memory_space<vmem>>, %arg8: memref<1x128xf32, #tpu.memory_space<vmem>>, %arg9: memref<1x128xf32, #tpu.memory_space<vmem>>, %arg10: memref<1x1xf32, #tpu.memory_space<vmem>>, %arg11: memref<1x1xf32, #tpu.memory_space<vmem>>, %arg12: memref<128x128xf32, #tpu.memory_space<vmem>>, %arg13: memref<128x128xbf16, #tpu.memory_space<vmem>>, %arg14: memref<1x128xf32, #tpu.memory_space<vmem>>) attributes {dimension_semantics = [#tpu.dimension_semantics<arbitrary>, #tpu.dimension_semantics<arbitrary>, #tpu.dimension_semantics<arbitrary>], iteration_bounds = array<i64: 2, 1, 1>, scalar_prefetch = 0 : i64, scratch_operands = 3 : i64, tpu.core_type = #tpu.core_type<tc>, window_params = [{transform_indices = @transform_0, window_bounds = array<i64: 128, 128>}, {pipeline_mode = #tpu.pipeline_mode<synchronous>, transform_indices = @transform_1, window_bounds = array<i64: 128, 128>}, {pipeline_mode = #tpu.pipeline_mode<synchronous>, transform_indices = @transform_2, window_bounds = array<i64: 128, 128>}, {pipeline_mode = #tpu.pipeline_mode<synchronous>, transform_indices = @transform_3, window_bounds = array<i64: 1, 128>}, {pipeline_mode = #tpu.pipeline_mode<synchronous>, transform_indices = @transform_4, window_bounds = array<i64: 128, 128>}, {pipeline_mode = #tpu.pipeline_mode<synchronous>, transform_indices = @transform_5, window_bounds = array<i64: 1, 128>}, {pipeline_mode = #tpu.pipeline_mode<synchronous>, transform_indices = @transform_6, window_bounds = array<i64: 1, 128>}, {pipeline_mode = #tpu.pipeline_mode<synchronous>, transform_indices = @transform_7, window_bounds = array<i64: 1, 1>}, {pipeline_mode = #tpu.pipeline_mode<synchronous>, transform_indices = @transform_8, window_bounds = array<i64: 1, 1>}]} {
    %c0_i32 = arith.constant 0 : i32
    %0 = arith.cmpi eq, %arg2, %c0_i32 : i32
    %c0_i32_0 = arith.constant 0 : i32
    %1 = arith.cmpi eq, %arg2, %c0_i32_0 : i32
    %2 = arith.extui %1 : i1 to i32
    %c0_i32_1 = arith.constant 0 : i32
    %3 = arith.cmpi ne, %2, %c0_i32_1 : i32
    scf.if %3 {
      %cst = arith.constant 0.000000e+00 : f32
      %34 = vector.broadcast %cst : f32 to vector<128x128xf32>
      %c0_17 = arith.constant 0 : index
      %c0_18 = arith.constant 0 : index
      %35 = vector.load %arg12[%c0_17, %c0_18] : memref<128x128xf32, #tpu.memory_space<vmem>>, vector<128x128xf32>
      tpu.vector_store %arg12[%c0_17, %c0_18], %34 {strides = array<i32>} : memref<128x128xf32, #tpu.memory_space<vmem>>, vector<128x128xf32>,
    } else {
    }
    %c1_i32 = arith.constant 1 : i32
    %4 = arith.cmpi eq, %arg0, %c1_i32 : i32
    %c0_i32_2 = arith.constant 0 : i32
    %5 = arith.cmpi eq, %arg1, %c0_i32_2 : i32
    %c0_i32_3 = arith.constant 0 : i32
    %6 = arith.cmpi eq, %arg2, %c0_i32_3 : i32
    %7 = arith.andi %5, %6 : i1
    %8 = arith.andi %4, %7 : i1
    %9 = arith.extui %8 : i1 to i32
    %c0_i32_4 = arith.constant 0 : i32
    %10 = arith.cmpi ne, %9, %c0_i32_4 : i32
    scf.if %10 {
      %cst = arith.constant 0.000000e+00 : f32
      %34 = vector.broadcast %cst : f32 to vector<1x128xf32>
      %c0_17 = arith.constant 0 : index
      %c0_18 = arith.constant 0 : index
      %35 = vector.load %arg14[%c0_17, %c0_18] : memref<1x128xf32, #tpu.memory_space<vmem>>, vector<1x128xf32>
      tpu.vector_store %arg14[%c0_17, %c0_18], %34 {strides = array<i32>} : memref<1x128xf32, #tpu.memory_space<vmem>>, vector<1x128xf32>,
    } else {
    }
    %c0 = arith.constant 0 : index
    %c0_5 = arith.constant 0 : index
    %11 = vector.load %arg3[%c0, %c0_5] : memref<128x128xbf16, #tpu.memory_space<vmem>>, vector<128x128xbf16>
    %c128_i32 = arith.constant 128 : i32
    %12 = arith.muli %arg2, %c128_i32 : i32
    %13 = tpu.assume_multiple %12, 128 : i32
    %c0_i32_6 = arith.constant 0 : i32
    %14 = arith.cmpi eq, %arg0, %c0_i32_6 : i32
    %15 = arith.extui %14 : i1 to i32
    %c0_i32_7 = arith.constant 0 : i32
    %16 = arith.cmpi ne, %15, %c0_i32_7 : i32
    scf.if %16 {
      %34 = arith.index_cast %13 : i32 to index
      %c0_17 = arith.constant 0 : index
      %35 = vector.load %arg4[%34, %c0_17] : memref<128x128xbf16, #tpu.memory_space<vmem>>, vector<128x128xbf16>
      %c0_18 = arith.constant 0 : index
      %c0_19 = arith.constant 0 : index
      %36 = vector.load %arg12[%c0_18, %c0_19] : memref<128x128xf32, #tpu.memory_space<vmem>>, vector<128x128xf32>
      %cst = arith.constant dense<0.000000e+00> : vector<128x128xf32>
      %37 = tpu.matmul %11, %35, %cst {dimension_numbers = #tpu.dot_dimension_numbers<[1], [0], [0], [1], [0, 0, 1, 1], [], []>} : vector<128x128xbf16>, vector<128x128xbf16>, vector<128x128xf32> -> vector<128x128xf32>
      %38 = arith.addf %36, %37 : vector<128x128xf32>
      %c0_20 = arith.constant 0 : index
      %c0_21 = arith.constant 0 : index
      %39 = vector.load %arg12[%c0_20, %c0_21] : memref<128x128xf32, #tpu.memory_space<vmem>>, vector<128x128xf32>
      tpu.vector_store %arg12[%c0_20, %c0_21], %38 {strides = array<i32>} : memref<128x128xf32, #tpu.memory_space<vmem>>, vector<128x128xf32>,
    } else {
    }
    %c1_i32_8 = arith.constant 1 : i32
    %17 = arith.cmpi eq, %arg0, %c1_i32_8 : i32
    %18 = arith.extui %17 : i1 to i32
    %c0_i32_9 = arith.constant 0 : i32
    %19 = arith.cmpi ne, %18, %c0_i32_9 : i32
    scf.if %19 {
      %34 = arith.index_cast %13 : i32 to index
      %c0_17 = arith.constant 0 : index
      %35 = vector.load %arg13[%34, %c0_17] : memref<128x128xbf16, #tpu.memory_space<vmem>>, vector<128x128xbf16>
      %c0_18 = arith.constant 0 : index
      %c0_19 = arith.constant 0 : index
      %36 = vector.load %arg12[%c0_18, %c0_19] : memref<128x128xf32, #tpu.memory_space<vmem>>, vector<128x128xf32>
      %cst = arith.constant dense<0.000000e+00> : vector<128x128xf32>
      %37 = tpu.matmul %11, %35, %cst {dimension_numbers = #tpu.dot_dimension_numbers<[1], [0], [0], [1], [0, 0, 1, 1], [], []>} : vector<128x128xbf16>, vector<128x128xbf16>, vector<128x128xf32> -> vector<128x128xf32>
      %38 = arith.addf %36, %37 : vector<128x128xf32>
      %c0_20 = arith.constant 0 : index
      %c0_21 = arith.constant 0 : index
      %39 = vector.load %arg12[%c0_20, %c0_21] : memref<128x128xf32, #tpu.memory_space<vmem>>, vector<128x128xf32>
      tpu.vector_store %arg12[%c0_20, %c0_21], %38 {strides = array<i32>} : memref<128x128xf32, #tpu.memory_space<vmem>>, vector<128x128xf32>,
    } else {
    }
    %c0_i32_10 = arith.constant 0 : i32
    %20 = arith.cmpi eq, %arg0, %c0_i32_10 : i32
    %21 = arith.andi %0, %20 : i1
    %22 = arith.extui %21 : i1 to i32
    %c0_i32_11 = arith.constant 0 : i32
    %23 = arith.cmpi ne, %22, %c0_i32_11 : i32
    scf.if %23 {
      %c0_17 = arith.constant 0 : index
      %c0_18 = arith.constant 0 : index
      %34 = vector.load %arg12[%c0_17, %c0_18] : memref<128x128xf32, #tpu.memory_space<vmem>>, vector<128x128xf32>
      %35 = arith.truncf %34 : vector<128x128xf32> to vector<128x128xbf16>
      %c0_19 = arith.constant 0 : index
      %c0_20 = arith.constant 0 : index
      %36 = vector.load %arg5[%c0_19, %c0_20] : memref<128x128xbf16, #tpu.memory_space<vmem>>, vector<128x128xbf16>
      %cst = arith.constant dense<0.000000e+00> : vector<128x128xf32>
      %37 = tpu.matmul %35, %36, %cst {dimension_numbers = #tpu.dot_dimension_numbers<[1], [0], [0], [1], [0, 0, 1, 1], [], []>} : vector<128x128xbf16>, vector<128x128xbf16>, vector<128x128xf32> -> vector<128x128xf32>
      %c0_21 = arith.constant 0 : index
      %c0_22 = arith.constant 0 : index
      %38 = vector.load %arg6[%c0_21, %c0_22] : memref<1x128xf32, #tpu.memory_space<vmem>>, vector<1x128xf32>
      %39 = vector.broadcast %38 : vector<1x128xf32> to vector<128x128xf32>
      %40 = arith.addf %37, %39 : vector<128x128xf32>
      %cst_23 = arith.constant 0.000000e+00 : f32
      %41 = vector.broadcast %cst_23 : f32 to vector<128x128xf32>
      %42 = arith.maximumf %40, %41 : vector<128x128xf32>
      %c128_i32_24 = arith.constant 128 : i32
      %43 = arith.muli %arg1, %c128_i32_24 : i32
      %44 = tpu.assume_multiple %43, 128 : i32
      %45 = tpu.iota {dimensions = array<i32: 0>} : vector<128x1xi32>
      %46 = vector.broadcast %44 : i32 to vector<128x1xi32>
      %47 = arith.addi %46, %45 : vector<128x1xi32>
      %c8_i32 = arith.constant 8 : i32
      %48 = vector.broadcast %c8_i32 : i32 to vector<128x1xi32>
      %49 = arith.cmpi slt, %47, %48 : vector<128x1xi32>
      %cst_25 = arith.constant 0.000000e+00 : f32
      %50 = vector.shape_cast %49 : vector<128x1xi1> to vector<128x1xi1>
      %51 = vector.broadcast %50 : vector<128x1xi1> to vector<128x128xi1>
      %52 = vector.broadcast %cst_25 : f32 to vector<128x128xf32>
      %53 = arith.select %51, %42, %52 : vector<128x128xi1>, vector<128x128xf32>
      %54 = arith.truncf %53 : vector<128x128xf32> to vector<128x128xbf16>
      %55 = arith.index_cast %44 : i32 to index
      %c0_26 = arith.constant 0 : index
      %56 = vector.load %arg13[%55, %c0_26] : memref<128x128xbf16, #tpu.memory_space<vmem>>, vector<128x128xbf16>
      tpu.vector_store %arg13[%55, %c0_26], %54 {strides = array<i32>} : memref<128x128xbf16, #tpu.memory_space<vmem>>, vector<128x128xbf16>,
    } else {
    }
    %c1_i32_12 = arith.constant 1 : i32
    %24 = arith.cmpi eq, %arg0, %c1_i32_12 : i32
    %25 = arith.andi %0, %24 : i1
    %26 = arith.extui %25 : i1 to i32
    %c0_i32_13 = arith.constant 0 : i32
    %27 = arith.cmpi ne, %26, %c0_i32_13 : i32
    scf.if %27 {
      %c0_17 = arith.constant 0 : index
      %c0_18 = arith.constant 0 : index
      %34 = vector.load %arg12[%c0_17, %c0_18] : memref<128x128xf32, #tpu.memory_space<vmem>>, vector<128x128xf32>
      %35 = arith.truncf %34 : vector<128x128xf32> to vector<128x128xbf16>
      %c0_19 = arith.constant 0 : index
      %c0_20 = arith.constant 0 : index
      %36 = vector.load %arg7[%c0_19, %c0_20] : memref<128x128xbf16, #tpu.memory_space<vmem>>, vector<128x128xbf16>
      %cst = arith.constant dense<0.000000e+00> : vector<128x128xf32>
      %37 = tpu.matmul %35, %36, %cst {dimension_numbers = #tpu.dot_dimension_numbers<[1], [0], [0], [1], [0, 0, 1, 1], [], []>} : vector<128x128xbf16>, vector<128x128xbf16>, vector<128x128xf32> -> vector<128x128xf32>
      %c0_21 = arith.constant 0 : index
      %c0_22 = arith.constant 0 : index
      %38 = vector.load %arg14[%c0_21, %c0_22] : memref<1x128xf32, #tpu.memory_space<vmem>>, vector<1x128xf32>
      %cst_23 = arith.constant dense<0.000000e+00> : vector<128xf32>
      %39 = vector.multi_reduction <add>, %37, %cst_23 [0] : vector<128x128xf32> to vector<128xf32>
      %40 = vector.shape_cast %39 : vector<128xf32> to vector<1x128xf32>
      %41 = arith.addf %38, %40 : vector<1x128xf32>
      %c0_24 = arith.constant 0 : index
      %c0_25 = arith.constant 0 : index
      %42 = vector.load %arg14[%c0_24, %c0_25] : memref<1x128xf32, #tpu.memory_space<vmem>>, vector<1x128xf32>
      tpu.vector_store %arg14[%c0_24, %c0_25], %41 {strides = array<i32>} : memref<1x128xf32, #tpu.memory_space<vmem>>, vector<1x128xf32>,
    } else {
    }
    %c1_i32_14 = arith.constant 1 : i32
    %28 = arith.cmpi eq, %arg0, %c1_i32_14 : i32
    %29 = arith.andi %0, %28 : i1
    %c0_i32_15 = arith.constant 0 : i32
    %30 = arith.cmpi eq, %arg1, %c0_i32_15 : i32
    %31 = arith.andi %29, %30 : i1
    %32 = arith.extui %31 : i1 to i32
    %c0_i32_16 = arith.constant 0 : i32
    %33 = arith.cmpi ne, %32, %c0_i32_16 : i32
    scf.if %33 {
      %c0_17 = arith.constant 0 : index
      %c0_18 = arith.constant 0 : index
      %34 = vector.load %arg14[%c0_17, %c0_18] : memref<1x128xf32, #tpu.memory_space<vmem>>, vector<1x128xf32>
      %cst = arith.constant 1.250000e-01 : f32
      %35 = vector.broadcast %cst : f32 to vector<1x128xf32>
      %36 = arith.mulf %34, %35 : vector<1x128xf32>
      %c0_19 = arith.constant 0 : index
      %c0_20 = arith.constant 0 : index
      %37 = vector.load %arg8[%c0_19, %c0_20] : memref<1x128xf32, #tpu.memory_space<vmem>>, vector<1x128xf32>
      %38 = arith.addf %36, %37 : vector<1x128xf32>
      %c0_21 = arith.constant 0 : index
      %c0_22 = arith.constant 0 : index
      %39 = vector.load %arg9[%c0_21, %c0_22] : memref<1x128xf32, #tpu.memory_space<vmem>>, vector<1x128xf32>
      %40 = arith.mulf %38, %39 : vector<1x128xf32>
      %cst_23 = arith.constant dense<0.000000e+00> : vector<1xf32>
      %41 = vector.multi_reduction <add>, %40, %cst_23 [1] : vector<1x128xf32> to vector<1xf32>
      %42 = vector.shape_cast %41 : vector<1xf32> to vector<1x1xf32>
      %c0_24 = arith.constant 0 : index
      %c0_25 = arith.constant 0 : index
      %43 = vector.load %arg10[%c0_24, %c0_25] : memref<1x1xf32, #tpu.memory_space<vmem>>, vector<1x1xf32>
      %44 = arith.addf %42, %43 : vector<1x1xf32>
      %45 = arith.negf %44 : vector<1x1xf32>
      %46 = math.exp %45 : vector<1x1xf32>
      %cst_26 = arith.constant 1.000000e+00 : f32
      %47 = vector.broadcast %cst_26 : f32 to vector<1x1xf32>
      %48 = arith.addf %47, %46 : vector<1x1xf32>
      %49 = arith.divf %47, %48 : vector<1x1xf32>
      %c0_27 = arith.constant 0 : index
      %c0_28 = arith.constant 0 : index
      %50 = vector.load %arg11[%c0_27, %c0_28] : memref<1x1xf32, #tpu.memory_space<vmem>>, vector<1x1xf32>
      tpu.vector_store %arg11[%c0_27, %c0_28], %49 {strides = array<i32>} : memref<1x1xf32, #tpu.memory_space<vmem>>, vector<1x1xf32>,
    } else {
    }
    return
  }
  func.func @transform_0(%arg0: i32, %arg1: i32, %arg2: i32) -> (i32, i32) {
    %c0_i32 = arith.constant 0 : i32
    return %arg1, %arg2 : i32, i32
  }
  func.func @transform_1(%arg0: i32, %arg1: i32, %arg2: i32) -> (i32, i32) {
    %c0_i32 = arith.constant 0 : i32
    %c0_i32_0 = arith.constant 0 : i32
    %c0_i32_1 = arith.constant 0 : i32
    return %c0_i32, %c0_i32_0 : i32, i32
  }
  func.func @transform_2(%arg0: i32, %arg1: i32, %arg2: i32) -> (i32, i32) {
    %c0_i32 = arith.constant 0 : i32
    %c0_i32_0 = arith.constant 0 : i32
    %c0_i32_1 = arith.constant 0 : i32
    return %c0_i32, %c0_i32_0 : i32, i32
  }
  func.func @transform_3(%arg0: i32, %arg1: i32, %arg2: i32) -> (i32, i32) {
    %c0_i32 = arith.constant 0 : i32
    %c0_i32_0 = arith.constant 0 : i32
    %c0_i32_1 = arith.constant 0 : i32
    return %c0_i32, %c0_i32_0 : i32, i32
  }
  func.func @transform_4(%arg0: i32, %arg1: i32, %arg2: i32) -> (i32, i32) {
    %c0_i32 = arith.constant 0 : i32
    %c0_i32_0 = arith.constant 0 : i32
    %c0_i32_1 = arith.constant 0 : i32
    return %c0_i32, %c0_i32_0 : i32, i32
  }
  func.func @transform_5(%arg0: i32, %arg1: i32, %arg2: i32) -> (i32, i32) {
    %c0_i32 = arith.constant 0 : i32
    %c0_i32_0 = arith.constant 0 : i32
    %c0_i32_1 = arith.constant 0 : i32
    return %c0_i32, %c0_i32_0 : i32, i32
  }
  func.func @transform_6(%arg0: i32, %arg1: i32, %arg2: i32) -> (i32, i32) {
    %c0_i32 = arith.constant 0 : i32
    %c0_i32_0 = arith.constant 0 : i32
    %c0_i32_1 = arith.constant 0 : i32
    return %c0_i32, %c0_i32_0 : i32, i32
  }
  func.func @transform_7(%arg0: i32, %arg1: i32, %arg2: i32) -> (i32, i32) {
    %c0_i32 = arith.constant 0 : i32
    %c0_i32_0 = arith.constant 0 : i32
    %c0_i32_1 = arith.constant 0 : i32
    return %c0_i32, %c0_i32_0 : i32, i32
  }
  func.func @transform_8(%arg0: i32, %arg1: i32, %arg2: i32) -> (i32, i32) {
    %c0_i32 = arith.constant 0 : i32
    %c0_i32_0 = arith.constant 0 : i32
    %c0_i32_1 = arith.constant 0 : i32
    return %c0_i32, %c0_i32_0 : i32, i32
  }
}

</mosaic_0001>

<bundles_post_ra>
// kernel: fraud_gnn_forward.1
= control target key start
LH: loop header
LB: loop body
LE: loop exit
PB: predicated region body
PF: predicated region fallthrough
CT: control target
= control target key end

     0   :  { %s2233_s0 = inlined_call_operand.vmem [shape: bf16[128,128], index: 0, kind: input, shape index: {}]   ;;  %s2234_s1 = inlined_call_operand.vmem [shape: bf16[128,128], index: 1, kind: input, shape index: {}]   ;;  %s2235_s2 = inlined_call_operand.vmem [shape: bf16[128,128], index: 2, kind: input, shape index: {}]   ;;  %s2236_s3 = inlined_call_operand.vmem [shape: f32[1,128], index: 3, kind: input, shape index: {}]   ;;  %s2237_s4 = inlined_call_operand.vmem [shape: bf16[128,128], index: 4, kind: input, shape index: {}]   ;;  %s2238_s5 = inlined_call_operand.vmem [shape: f32[1,128], index: 5, kind: input, shape index: {}]   ;;  %s2239_s6 = inlined_call_operand.vmem [shape: f32[1,128], index: 6, kind: input, shape index: {}]   ;;  %s2240_s7 = inlined_call_operand.<no memory space> [shape: f32[1,1], index: 7, kind: input, shape index: {}]   ;;  %s2241_s8 = inlined_call_operand.hbm [shape: f32[1,1], index: 8, kind: output, shape index: {}]  }
   0x1   :  { %v13_v0 = vstv %s2240_s7 }
   0x2   :  { %14 = vst [vmem:[#allocation5] sm:$0x1] %v13_v0 }
   0x3   :  { %15 = vsyncpa [#allocation7], 0  ;;  %s1970_s29 = smov 0   ;;  %s1972_s30 = smov 0  }
   0x4   :  { %s1974_s9 = smov 0  }
   0x5 LB: > { %s1484_s7 = sadd.s32 4294967295, %s1915_s9   ;;  %s40_s10 = sadd.s32 1, %s1911_s30  ;;  %s1915_s9 = sphi %s1974_s9, %s21_s9   ;;  %s1911_s30 = sphi %s1972_s30, %s2244_s30   ;;  %s1907_s29 = sphi %s1970_s29, %s2243_s29  }
   0x6   : > { %p42_p0 = scmp.ge.s32.totalorder %s40_s10, 2  ;;  %p1487_p1 = scmp.ge.s32.totalorder %s1915_s9, 1 }
   0x7   : > { %p285_p2 = scmp.lt.s32.totalorder %s1915_s9, 3 }
   0x8   : > { %s2246_s10 = smov (%p42_p0, %s40_s10), 0 }
   0x9   : > { %p286_p3 = pnand %p1487_p1, %p285_p2 }
   0xa   : > { %p347_p4 = scmp.eq.s32.totalorder (!%p286_p3), %s1907_s29, 1  ;;  %v1917_v1 = vmov (!%p286_p3), 0.0  }
   0xb   : > { %289 = sbr.rel (%p286_p3) target bundleno = 1309 (0x51d), region = 52  ;;  %331 = vst [vmem:[#allocation2] sm:$0xff] (!%p286_p3), %v1917_v1  ;;  %332 = vst [vmem:[#allocation2 + $0x8] sm:$0xff] (!%p286_p3), %v1917_v1 }
   0xc   : > { %333 = vst [vmem:[#allocation2 + $0x10] sm:$0xff] (!%p286_p3), %v1917_v1  ;;  %334 = vst [vmem:[#allocation2 + $0x18] sm:$0xff] (!%p286_p3), %v1917_v1 }
   0xd   : > { %335 = vst [vmem:[#allocation2 + $0x20] sm:$0xff] (!%p286_p3), %v1917_v1  ;;  %336 = vst [vmem:[#allocation2 + $0x28] sm:$0xff] (!%p286_p3), %v1917_v1 }
   0xe   : > { %337 = vst [vmem:[#allocation2 + $0x30] sm:$0xff] (!%p286_p3), %v1917_v1  ;;  %338 = vst [vmem:[#allocation2 + $0x38] sm:$0xff] (!%p286_p3), %v1917_v1 }
   0xf   : > { %339 = vst [vmem:[#allocation2 + $0x40] sm:$0xff] (!%p286_p3), %v1917_v1  ;;  %340 = vst [vmem:[#allocation2 + $0x48] sm:$0xff] (!%p286_p3), %v1917_v1 }
  0x10   : > { %341 = vst [vmem:[#allocation2 + $0x50] sm:$0xff] (!%p286_p3), %v1917_v1  ;;  %342 = vst [vmem:[#allocation2 + $0x58] sm:$0xff] (!%p286_p3), %v1917_v1 }
  0x11   : > { %343 = vst [vmem:[#allocation2 + $0x60] sm:$0xff] (!%p286_p3), %v1917_v1  ;;  %344 = vst [vmem:[#allocation2 + $0x68] sm:$0xff] (!%p286_p3), %v1917_v1 }
  0x12   : > { %345 = vst [vmem:[#allocation2 + $0x70] sm:$0xff] %v1917_v1  ;;  %346 = vst [vmem:[#allocation2 + $0x78] sm:$0xff] %v1917_v1  ;;  %354 = sbr.rel (!%p347_p4) target bundleno = 25 (0x19), region = 60  ;;  %v1918_v2 = vmov (%p347_p4), 0.0  }
  0x13   : > { %355 = vst [vmem:[#allocation4] sm:$0x1] (%p347_p4), %v1918_v2 }
  0x19 PF: > { %v1997_v3 = vld [vmem:[%s2233_s0] sm:$0xf]  ;;  %v2002_v4 = vld [vmem:[%s2233_s0 + $0x4] sm:$0xf]  ;;  %v2007_v5 = vld [vmem:[%s2233_s0 + $0x8] sm:$0xf] }
  0x1a   : > { %v2012_v6 = vld [vmem:[%s2233_s0 + $0xc] sm:$0xf]  ;;  %v2017_v7 = vld [vmem:[%s2233_s0 + $0x10] sm:$0xf]  ;;  %v2022_v8 = vld [vmem:[%s2233_s0 + $0x14] sm:$0xf] }
  0x1b   : > { %v2027_v9 = vld [vmem:[%s2233_s0 + $0x18] sm:$0xf]  ;;  %v2032_v10 = vld [vmem:[%s2233_s0 + $0x1c] sm:$0xf]  ;;  %v2037_v11 = vld [vmem:[%s2233_s0 + $0x20] sm:$0xf] }
  0x1c   : > { %v2042_v12 = vld [vmem:[%s2233_s0 + $0x24] sm:$0xf]  ;;  %v2047_v13 = vld [vmem:[%s2233_s0 + $0x28] sm:$0xf]  ;;  %v2052_v14 = vld [vmem:[%s2233_s0 + $0x2c] sm:$0xf] }
  0x1d   : > { %v2057_v15 = vld [vmem:[%s2233_s0 + $0x30] sm:$0xf]  ;;  %v2062_v16 = vld [vmem:[%s2233_s0 + $0x34] sm:$0xf]  ;;  %v2067_v17 = vld [vmem:[%s2233_s0 + $0x38] sm:$0xf] }
  0x1e   : > { %v2072_v18 = vld [vmem:[%s2233_s0 + $0x3c] sm:$0xf]  ;;  %p373_p5 = scmp.eq.s32.totalorder %s1907_s29, 0  ;;  %p1489_p6 = scmp.ne.s32.totalorder %s1907_s29, 0 }
  0x1f   : > { %v1835_v19 = vld [vmem:[%s2234_s1] sm:$0xff] (!%p1489_p6)   ;;  %v1836_v20 = vld [vmem:[%s2234_s1 + $0x8] sm:$0xff] (!%p1489_p6)   ;;  %v1490_v21 = vcombine.low (!%p1489_p6), %v1997_v3, %v2002_v4  ;;  %v1494_v22 = vcombine.low (!%p1489_p6), %v2037_v11, %v2042_v12  ;;  %v1837_v23 = vld [vmem:[%s2234_s1 + $0x10] sm:$0xff] (!%p1489_p6)   ;;  %v1491_v29 = vcombine.low (!%p1489_p6), %v2007_v5, %v2012_v6  ;;  %v1495_v30 = vcombine.low (!%p1489_p6), %v2047_v13, %v2052_v14 }
  0x20   : > { %376 = sbr.rel (%p1489_p6) target bundleno = 290 (0x122), region = 64  ;;  %1608 = vmatprep.subr.bf16.mxu0 (!%p1489_p6), %v1835_v19  ;;  %1736 = vmatprep.subr.bf16.mxu1 (!%p1489_p6), %v1835_v19  ;;  %v1838_v24 = vld [vmem:[%s2234_s1 + $0x18] sm:$0xff] (!%p1489_p6)   ;;  %v1839_v25 = vld [vmem:[%s2234_s1 + $0x20] sm:$0xff] (!%p1489_p6)   ;;  %v1840_v26 = vld [vmem:[%s2234_s1 + $0x28] sm:$0xff] (!%p1489_p6)   ;;  %v1492_v31 = vcombine.low (!%p1489_p6), %v2017_v7, %v2022_v8  ;;  %v1496_v32 = vcombine.low (!%p1489_p6), %v2057_v15, %v2062_v16  ;;  %v1493_v33 = vcombine.low (!%p1489_p6), %v2027_v9, %v2032_v10 }
  0x21   : > { %1609 = vmatpush3.bf16.msra.mxu0 (!%p1489_p6), %v1835_v19  ;;  %1744 = vmatpush3.bf16.msra.mxu1 (!%p1489_p6), %v1835_v19  ;;  %v1841_v27 = vld [vmem:[%s2234_s1 + $0x30] sm:$0xff] (!%p1489_p6)   ;;  %v1842_v28 = vld [vmem:[%s2234_s1 + $0x38] sm:$0xff] (!%p1489_p6)   ;;  %v1497_v34 = vcombine.low (!%p1489_p6), %v2067_v17, %v2072_v18  ;;  %v397_v37 = vld [vmem:[#allocation2] sm:$0xff] (!%p1489_p6) }
  0x22   : > { %1610 = vmatprep.subr.bf16.mxu0 (!%p1489_p6), %v1836_v20  ;;  %1737 = vmatprep.subr.bf16.mxu1 (!%p1489_p6), %v1836_v20  ;;  %v399_v35 = vld [vmem:[#allocation2 + $0x10] sm:$0xff] (!%p1489_p6)  ;;  %v405_v38 = vld [vmem:[#allocation2 + $0x40] sm:$0xff] (!%p1489_p6)  ;;  %v400_v41 = vld [vmem:[#allocation2 + $0x18] sm:$0xff] (!%p1489_p6) }
  0x23   : > { %1624 = vmatprep.mubr.bf16.mxu0 (!%p1489_p6), %v1490_v21  ;;  %1632 = vmatprep.mubr.bf16.mxu1 (!%p1489_p6), %v1494_v22  ;;  %v407_v36 = vld [vmem:[#allocation2 + $0x50] sm:$0xff] (!%p1489_p6)  ;;  %v408_v42 = vld [vmem:[#allocation2 + $0x58] sm:$0xff] (!%p1489_p6)  ;;  %v398_v47 = vld [vmem:[#allocation2 + $0x8] sm:$0xff] (!%p1489_p6) }
  0x24   : > { %v406_v48 = vld [vmem:[#allocation2 + $0x48] sm:$0xff] (!%p1489_p6)  ;;  %v403_v59 = vld [vmem:[#allocation2 + $0x30] sm:$0xff] (!%p1489_p6)  ;;  %v401_v61 = vld [vmem:[#allocation2 + $0x20] sm:$0xff] (!%p1489_p6) }
  0x25   : > { %1611 = vmatpush3.bf16.msra.mxu0 (!%p1489_p6), %v1836_v20  ;;  %1745 = vmatpush3.bf16.msra.mxu1 (!%p1489_p6), %v1836_v20  ;;  %v411_v60 = vld [vmem:[#allocation2 + $0x70] sm:$0xff] (!%p1489_p6)  ;;  %v409_v62 = vld [vmem:[#allocation2 + $0x60] sm:$0xff] (!%p1489_p6)  ;;  %v404_v1 = vld [vmem:[#allocation2 + $0x38] sm:$0xff] (!%p1489_p6) }
  0x26   : > { %1612 = vmatprep.subr.bf16.mxu0 (!%p1489_p6), %v1837_v23  ;;  %1738 = vmatprep.subr.bf16.mxu1 (!%p1489_p6), %v1837_v23  ;;  %v412_v2 = vld [vmem:[#allocation2 + $0x78] sm:$0xff] (!%p1489_p6) }
  0x29   : > { %1613 = vmatpush3.bf16.msra.mxu0 %v1837_v23  ;;  %1746 = vmatpush3.bf16.msra.mxu1 %v1837_v23  ;;  %v402_v23 = vld [vmem:[#allocation2 + $0x28] sm:$0xff] }
  0x2a   : > { %1614 = vmatprep.subr.bf16.mxu0 %v1838_v24  ;;  %1739 = vmatprep.subr.bf16.mxu1 %v1838_v24 }
  0x2d   : > { %1615 = vmatpush3.bf16.msra.mxu0 %v1838_v24  ;;  %1747 = vmatpush3.bf16.msra.mxu1 %v1838_v24  ;;  %v410_v24 = vld [vmem:[#allocation2 + $0x68] sm:$0xff] }
  0x2e   : > { %1616 = vmatprep.subr.bf16.mxu0 %v1839_v25  ;;  %1740 = vmatprep.subr.bf16.mxu1 %v1839_v25 }
  0x31   : > { %1617 = vmatpush3.bf16.msra.mxu0 %v1839_v25  ;;  %1748 = vmatpush3.bf16.msra.mxu1 %v1839_v25 }
  0x32   : > { %1618 = vmatprep.subr.bf16.mxu0 %v1840_v26  ;;  %1741 = vmatprep.subr.bf16.mxu1 %v1840_v26 }
  0x35   : > { %1619 = vmatpush3.bf16.msra.mxu0 %v1840_v26  ;;  %1749 = vmatpush3.bf16.msra.mxu1 %v1840_v26 }
  0x36   : > { %1620 = vmatprep.subr.bf16.mxu0 %v1841_v27  ;;  %1742 = vmatprep.subr.bf16.mxu1 %v1841_v27 }
  0x39   : > { %1621 = vmatpush3.bf16.msra.mxu0 %v1841_v27  ;;  %1750 = vmatpush3.bf16.msra.mxu1 %v1841_v27 }
  0x3a   : > { %1622 = vmatprep.subr.bf16.mxu0 %v1842_v28  ;;  %1743 = vmatprep.subr.bf16.mxu1 %v1842_v28 }
  0x3d   : > { %1623 = vmatpush3.bf16.msra.mxu0 %v1842_v28  ;;  %1751 = vmatpush3.bf16.msra.mxu1 %v1842_v28 }
  0x40   : > { %1625 = vmatmul.mubr.bf16.vlgmr.msra.gmra.mrb[0].mxu0 %v1491_v29  ;;  %1633 = vmatmul.mubr.bf16.vlgmr.msra.gmra.mrb[0].mxu1 %v1495_v30 }
  0x41   : > { %1628 = vmatprep.mubr.bf16.mxu0 %v1492_v31  ;;  %1636 = vmatprep.mubr.bf16.mxu1 %v1496_v32 }
  0x48   : > { %1629 = vmatmul.mubr.bf16.gmra.mrb[4].mxu0 %v1493_v33  ;;  %1637 = vmatmul.mubr.bf16.gmra.mrb[4].mxu1 %v1497_v34 }
 0x113   : > { %v1626_v39 = vpop.f32.mrb[0].mxu0  ;;  %v1634_v40 = vpop.f32.mrb[0].mxu1 }
 0x114   : > { %v608_v43 = vadd.f32 %v1626_v39, %v399_v35  ;;  %v616_v44 = vadd.f32 %v1634_v40, %v407_v36  ;;  %v543_v45 = vpop.f32.mrb[1].mxu0  ;;  %v575_v46 = vpop.f32.mrb[1].mxu1 }
 0x115   : > { %v606_v49 = vadd.f32 %v543_v45, %v397_v37  ;;  %v614_v50 = vadd.f32 %v575_v46, %v405_v38  ;;  %v1627_v51 = vpop.f32.mrb[2].mxu0  ;;  %v1635_v52 = vpop.f32.mrb[2].mxu1 }
 0x116   : > { %624 = vst [vmem:[#allocation2 + $0x10] sm:$0xff] %v608_v43  ;;  %632 = vst [vmem:[#allocation2 + $0x50] sm:$0xff] %v616_v44  ;;  %v609_v53 = vadd.f32 %v1627_v51, %v400_v41  ;;  %v617_v54 = vadd.f32 %v1635_v52, %v408_v42  ;;  %v546_v55 = vpop.f32.mrb[3].mxu0  ;;  %v578_v56 = vpop.f32.mrb[3].mxu1 }
 0x117   : > { %622 = vst [vmem:[#allocation2] sm:$0xff] %v606_v49  ;;  %630 = vst [vmem:[#allocation2 + $0x40] sm:$0xff] %v614_v50  ;;  %v607_v57 = vadd.f32 %v546_v55, %v398_v47  ;;  %v615_v58 = vadd.f32 %v578_v56, %v406_v48 }
 0x118   : > { %625 = vst [vmem:[#allocation2 + $0x18] sm:$0xff] %v609_v53  ;;  %633 = vst [vmem:[#allocation2 + $0x58] sm:$0xff] %v617_v54 }
 0x119   : > { %623 = vst [vmem:[#allocation2 + $0x8] sm:$0xff] %v607_v57  ;;  %631 = vst [vmem:[#allocation2 + $0x48] sm:$0xff] %v615_v58 }
 0x11b   : > { %v1630_v63 = vpop.f32.mrb[4].mxu0  ;;  %v1638_v0 = vpop.f32.mrb[4].mxu1 }
 0x11c   : > { %v612_v19 = vadd.f32 %v1630_v63, %v403_v59  ;;  %v620_v20 = vadd.f32 %v1638_v0, %v411_v60  ;;  %v559_v21 = vpop.f32.mrb[5].mxu0  ;;  %v591_v22 = vpop.f32.mrb[5].mxu1 }
 0x11d   : > { %v610_v25 = vadd.f32 %v559_v21, %v401_v61  ;;  %v618_v26 = vadd.f32 %v591_v22, %v409_v62  ;;  %v1631_v27 = vpop.f32.mrb[6].mxu0  ;;  %v1639_v28 = vpop.f32.mrb[6].mxu1 }
 0x11e   : > { %628 = vst [vmem:[#allocation2 + $0x30] sm:$0xff] %v612_v19  ;;  %636 = vst [vmem:[#allocation2 + $0x70] sm:$0xff] %v620_v20  ;;  %v613_v29 = vadd.f32 %v1631_v27, %v404_v1  ;;  %v621_v30 = vadd.f32 %v1639_v28, %v412_v2  ;;  %v562_v31 = vpop.f32.mrb[7].mxu0  ;;  %v594_v32 = vpop.f32.mrb[7].mxu1 }
 0x11f   : > { %626 = vst [vmem:[#allocation2 + $0x20] sm:$0xff] %v610_v25  ;;  %634 = vst [vmem:[#allocation2 + $0x60] sm:$0xff] %v618_v26  ;;  %v611_v33 = vadd.f32 %v562_v31, %v402_v23  ;;  %v619_v34 = vadd.f32 %v594_v32, %v410_v24 }
 0x120   : > { %629 = vst [vmem:[#allocation2 + $0x38] sm:$0xff] %v613_v29  ;;  %637 = vst [vmem:[#allocation2 + $0x78] sm:$0xff] %v621_v30 }
 0x121   : > { %627 = vst [vmem:[#allocation2 + $0x28] sm:$0xff] %v611_v33  ;;  %635 = vst [vmem:[#allocation2 + $0x68] sm:$0xff] %v619_v34 }
 0x122 PF: > { %p1506_p7 = scmp.ne.s32.totalorder %s1907_s29, 1 }
 0x123   : > { %v645_v35 = vld [vmem:[#allocation3] sm:$0xff] (!%p1506_p7)  ;;  %v646_v36 = vld [vmem:[#allocation3 + $0x8] sm:$0xff] (!%p1506_p7)  ;;  %v1507_v37 = vcombine.low (!%p1506_p7), %v1997_v3, %v2002_v4  ;;  %v1511_v38 = vcombine.low (!%p1506_p7), %v2037_v11, %v2042_v12  ;;  %v647_v39 = vld [vmem:[#allocation3 + $0x10] sm:$0xff] (!%p1506_p7)  ;;  %v1508_v41 = vcombine.low (!%p1506_p7), %v2007_v5, %v2012_v6  ;;  %v1512_v42 = vcombine.low (!%p1506_p7), %v2047_v13, %v2052_v14 }
 0x124   : > { %640 = sbr.rel (%p1506_p7) target bundleno = 550 (0x226), region = 68  ;;  %1640 = vmatprep.subr.bf16.mxu0 (!%p1506_p7), %v645_v35  ;;  %1752 = vmatprep.subr.bf16.mxu1 (!%p1506_p7), %v645_v35  ;;  %v648_v40 = vld [vmem:[#allocation3 + $0x18] sm:$0xff] (!%p1506_p7)  ;;  %v649_v3 = vld [vmem:[#allocation3 + $0x20] sm:$0xff] (!%p1506_p7)  ;;  %v650_v4 = vld [vmem:[#allocation3 + $0x28] sm:$0xff] (!%p1506_p7)  ;;  %v1509_v43 = vcombine.low (!%p1506_p7), %v2017_v7, %v2022_v8  ;;  %v1513_v44 = vcombine.low (!%p1506_p7), %v2057_v15, %v2062_v16  ;;  %v1510_v45 = vcombine.low (!%p1506_p7), %v2027_v9, %v2032_v10 }
 0x125   : > { %1641 = vmatpush3.bf16.msra.mxu0 (!%p1506_p7), %v645_v35  ;;  %1760 = vmatpush3.bf16.msra.mxu1 (!%p1506_p7), %v645_v35  ;;  %v651_v11 = vld [vmem:[#allocation3 + $0x30] sm:$0xff] (!%p1506_p7)  ;;  %v652_v12 = vld [vmem:[#allocation3 + $0x38] sm:$0xff] (!%p1506_p7)  ;;  %v1514_v5 = vcombine.low (!%p1506_p7), %v2067_v17, %v2072_v18  ;;  %v653_v14 = vld [vmem:[#allocation2] sm:$0xff] (!%p1506_p7) }
 0x126   : > { %1642 = vmatprep.subr.bf16.mxu0 (!%p1506_p7), %v646_v36  ;;  %1753 = vmatprep.subr.bf16.mxu1 (!%p1506_p7), %v646_v36  ;;  %v655_v6 = vld [vmem:[#allocation2 + $0x10] sm:$0xff] (!%p1506_p7)  ;;  %v661_v46 = vld [vmem:[#allocation2 + $0x40] sm:$0xff] (!%p1506_p7)  ;;  %v656_v47 = vld [vmem:[#allocation2 + $0x18] sm:$0xff] (!%p1506_p7) }
 0x127   : > { %1656 = vmatprep.mubr.bf16.mxu0 (!%p1506_p7), %v1507_v37  ;;  %1664 = vmatprep.mubr.bf16.mxu1 (!%p1506_p7), %v1511_v38  ;;  %v663_v13 = vld [vmem:[#allocation2 + $0x50] sm:$0xff] (!%p1506_p7)  ;;  %v664_v15 = vld [vmem:[#allocation2 + $0x58] sm:$0xff] (!%p1506_p7)  ;;  %v654_v51 = vld [vmem:[#allocation2 + $0x8] sm:$0xff] (!%p1506_p7) }
 0x128   : > { %v662_v52 = vld [vmem:[#allocation2 + $0x48] sm:$0xff] (!%p1506_p7)  ;;  %v659_v59 = vld [vmem:[#allocation2 + $0x30] sm:$0xff] (!%p1506_p7)  ;;  %v657_v61 = vld [vmem:[#allocation2 + $0x20] sm:$0xff] (!%p1506_p7) }
 0x129   : > { %1643 = vmatpush3.bf16.msra.mxu0 (!%p1506_p7), %v646_v36  ;;  %1761 = vmatpush3.bf16.msra.mxu1 (!%p1506_p7), %v646_v36  ;;  %v667_v60 = vld [vmem:[#allocation2 + $0x70] sm:$0xff] (!%p1506_p7)  ;;  %v665_v62 = vld [vmem:[#allocation2 + $0x60] sm:$0xff] (!%p1506_p7)  ;;  %v660_v1 = vld [vmem:[#allocation2 + $0x38] sm:$0xff] (!%p1506_p7) }
 0x12a   : > { %1644 = vmatprep.subr.bf16.mxu0 (!%p1506_p7), %v647_v39  ;;  %1754 = vmatprep.subr.bf16.mxu1 (!%p1506_p7), %v647_v39  ;;  %v668_v2 = vld [vmem:[#allocation2 + $0x78] sm:$0xff] (!%p1506_p7)  ;;  %v658_v23 = vld [vmem:[#allocation2 + $0x28] sm:$0xff] (!%p1506_p7) }
 0x12b   : > { %v666_v24 = vld [vmem:[#allocation2 + $0x68] sm:$0xff] }
 0x12d   : > { %1645 = vmatpush3.bf16.msra.mxu0 %v647_v39  ;;  %1762 = vmatpush3.bf16.msra.mxu1 %v647_v39 }
 0x12e   : > { %1646 = vmatprep.subr.bf16.mxu0 %v648_v40  ;;  %1755 = vmatprep.subr.bf16.mxu1 %v648_v40 }
 0x131   : > { %1647 = vmatpush3.bf16.msra.mxu0 %v648_v40  ;;  %1763 = vmatpush3.bf16.msra.mxu1 %v648_v40 }
 0x132   : > { %1648 = vmatprep.subr.bf16.mxu0 %v649_v3  ;;  %1756 = vmatprep.subr.bf16.mxu1 %v649_v3 }
 0x135   : > { %1649 = vmatpush3.bf16.msra.mxu0 %v649_v3  ;;  %1764 = vmatpush3.bf16.msra.mxu1 %v649_v3 }
 0x136   : > { %1650 = vmatprep.subr.bf16.mxu0 %v650_v4  ;;  %1757 = vmatprep.subr.bf16.mxu1 %v650_v4 }
 0x139   : > { %1651 = vmatpush3.bf16.msra.mxu0 %v650_v4  ;;  %1765 = vmatpush3.bf16.msra.mxu1 %v650_v4 }
 0x13a   : > { %1652 = vmatprep.subr.bf16.mxu0 %v651_v11  ;;  %1758 = vmatprep.subr.bf16.mxu1 %v651_v11 }
 0x13d   : > { %1653 = vmatpush3.bf16.msra.mxu0 %v651_v11  ;;  %1766 = vmatpush3.bf16.msra.mxu1 %v651_v11 }
 0x13e   : > { %1654 = vmatprep.subr.bf16.mxu0 %v652_v12  ;;  %1759 = vmatprep.subr.bf16.mxu1 %v652_v12 }
 0x141   : > { %1655 = vmatpush3.bf16.msra.mxu0 %v652_v12  ;;  %1767 = vmatpush3.bf16.msra.mxu1 %v652_v12 }
 0x144   : > { %1657 = vmatmul.mubr.bf16.vlgmr.msra.gmra.mrb[0].mxu0 %v1508_v41  ;;  %1665 = vmatmul.mubr.bf16.vlgmr.msra.gmra.mrb[0].mxu1 %v1512_v42 }
 0x145   : > { %1660 = vmatprep.mubr.bf16.mxu0 %v1509_v43  ;;  %1668 = vmatprep.mubr.bf16.mxu1 %v1513_v44 }
 0x14c   : > { %1661 = vmatmul.mubr.bf16.gmra.mrb[4].mxu0 %v1510_v45  ;;  %1669 = vmatmul.mubr.bf16.gmra.mrb[4].mxu1 %v1514_v5 }
 0x217   : > { %v1658_v7 = vpop.f32.mrb[0].mxu0  ;;  %v1666_v8 = vpop.f32.mrb[0].mxu1 }
 0x218   : > { %v816_v16 = vadd.f32 %v1658_v7, %v655_v6  ;;  %v824_v48 = vadd.f32 %v1666_v8, %v663_v13  ;;  %v751_v49 = vpop.f32.mrb[1].mxu0  ;;  %v783_v50 = vpop.f32.mrb[1].mxu1 }
 0x219   : > { %v814_v9 = vadd.f32 %v751_v49, %v653_v14  ;;  %v822_v10 = vadd.f32 %v783_v50, %v661_v46  ;;  %v1659_v53 = vpop.f32.mrb[2].mxu0  ;;  %v1667_v17 = vpop.f32.mrb[2].mxu1 }
 0x21a   : > { %832 = vst [vmem:[#allocation2 + $0x10] sm:$0xff] %v816_v16  ;;  %840 = vst [vmem:[#allocation2 + $0x50] sm:$0xff] %v824_v48  ;;  %v817_v18 = vadd.f32 %v1659_v53, %v656_v47  ;;  %v825_v54 = vadd.f32 %v1667_v17, %v664_v15  ;;  %v754_v55 = vpop.f32.mrb[3].mxu0  ;;  %v786_v56 = vpop.f32.mrb[3].mxu1 }
 0x21b   : > { %830 = vst [vmem:[#allocation2] sm:$0xff] %v814_v9  ;;  %838 = vst [vmem:[#allocation2 + $0x40] sm:$0xff] %v822_v10  ;;  %v815_v57 = vadd.f32 %v754_v55, %v654_v51  ;;  %v823_v58 = vadd.f32 %v786_v56, %v662_v52 }
 0x21c   : > { %833 = vst [vmem:[#allocation2 + $0x18] sm:$0xff] %v817_v18  ;;  %841 = vst [vmem:[#allocation2 + $0x58] sm:$0xff] %v825_v54 }
 0x21d   : > { %831 = vst [vmem:[#allocation2 + $0x8] sm:$0xff] %v815_v57  ;;  %839 = vst [vmem:[#allocation2 + $0x48] sm:$0xff] %v823_v58 }
 0x21f   : > { %v1662_v63 = vpop.f32.mrb[4].mxu0  ;;  %v1670_v0 = vpop.f32.mrb[4].mxu1 }
 0x220   : > { %v820_v19 = vadd.f32 %v1662_v63, %v659_v59  ;;  %v828_v20 = vadd.f32 %v1670_v0, %v667_v60  ;;  %v767_v21 = vpop.f32.mrb[5].mxu0  ;;  %v799_v22 = vpop.f32.mrb[5].mxu1 }
 0x221   : > { %v818_v25 = vadd.f32 %v767_v21, %v657_v61  ;;  %v826_v26 = vadd.f32 %v799_v22, %v665_v62  ;;  %v1663_v27 = vpop.f32.mrb[6].mxu0  ;;  %v1671_v28 = vpop.f32.mrb[6].mxu1 }
 0x222   : > { %836 = vst [vmem:[#allocation2 + $0x30] sm:$0xff] %v820_v19  ;;  %844 = vst [vmem:[#allocation2 + $0x70] sm:$0xff] %v828_v20  ;;  %v821_v29 = vadd.f32 %v1663_v27, %v660_v1  ;;  %v829_v30 = vadd.f32 %v1671_v28, %v668_v2  ;;  %v770_v31 = vpop.f32.mrb[7].mxu0  ;;  %v802_v32 = vpop.f32.mrb[7].mxu1 }
 0x223   : > { %834 = vst [vmem:[#allocation2 + $0x20] sm:$0xff] %v818_v25  ;;  %842 = vst [vmem:[#allocation2 + $0x60] sm:$0xff] %v826_v26  ;;  %v819_v33 = vadd.f32 %v770_v31, %v658_v23  ;;  %v827_v34 = vadd.f32 %v802_v32, %v666_v24 }
 0x224   : > { %837 = vst [vmem:[#allocation2 + $0x38] sm:$0xff] %v821_v29  ;;  %845 = vst [vmem:[#allocation2 + $0x78] sm:$0xff] %v829_v30 }
 0x225   : > { %835 = vst [vmem:[#allocation2 + $0x28] sm:$0xff] %v819_v33  ;;  %843 = vst [vmem:[#allocation2 + $0x68] sm:$0xff] %v827_v34 }
 0x226 PF: > { %849 = sbr.rel (!%p373_p5) target bundleno = 806 (0x326), region = 72  ;;  %v1843_v35 = vld [vmem:[%s2235_s2] sm:$0xff] (%p373_p5)   ;;  %v1844_v36 = vld [vmem:[%s2235_s2 + $0x8] sm:$0xff] (%p373_p5)   ;;  %v1845_v37 = vld [vmem:[%s2235_s2 + $0x10] sm:$0xff] (%p373_p5)   ;;  %v1919_v53 = vmov (%p373_p5), 0.0|0.0   ;;  %v1920_v63 = vmov (%p373_p5), 0.0  }
 0x227   : > { %1672 = vmatprep.subr.bf16.mxu0 (%p373_p5), %v1843_v35  ;;  %1768 = vmatprep.subr.bf16.mxu1 (%p373_p5), %v1843_v35  ;;  %v1846_v38 = vld [vmem:[%s2235_s2 + $0x18] sm:$0xff] (%p373_p5)   ;;  %v850_v39 = vld [vmem:[#allocation2] sm:$0xff] (%p373_p5)  ;;  %v851_v40 = vld [vmem:[#allocation2 + $0x8] sm:$0xff] (%p373_p5)  ;;  %1170 = vst [vmem:[#allocation3 + $0x8] sm:$0xff] (%p373_p5), %v1919_v53 }
 0x228   : > { %1673 = vmatpush3.bf16.msra.mxu0 (%p373_p5), %v1843_v35  ;;  %1776 = vmatpush3.bf16.msra.mxu1 (%p373_p5), %v1843_v35  ;;  %v858_v3 = vld [vmem:[#allocation2 + $0x40] sm:$0xff] (%p373_p5)  ;;  %v866_v4 = vpack.c.bf16 (%p373_p5), %v851_v40, %v850_v39  ;;  %v859_v11 = vld [vmem:[#allocation2 + $0x48] sm:$0xff] (%p373_p5)  ;;  %v1849_v43 = vld [vmem:[%s2235_s2 + $0x30] sm:$0xff] (%p373_p5)   ;;  %1171 = vst [vmem:[#allocation3 + $0x10] sm:$0xff] (%p373_p5), %v1919_v53 }
 0x229   : > { %1674 = vmatprep.subr.bf16.mxu0 (%p373_p5), %v1844_v36  ;;  %1769 = vmatprep.subr.bf16.mxu1 (%p373_p5), %v1844_v36  ;;  %v870_v12 = vpack.c.bf16 (%p373_p5), %v859_v11, %v858_v3  ;;  %v1847_v41 = vld [vmem:[%s2235_s2 + $0x20] sm:$0xff] (%p373_p5)   ;;  %v1848_v42 = vld [vmem:[%s2235_s2 + $0x28] sm:$0xff] (%p373_p5)   ;;  %v1850_v44 = vld [vmem:[%s2235_s2 + $0x38] sm:$0xff] (%p373_p5)   ;;  %1172 = vst [vmem:[#allocation3 + $0x18] sm:$0xff] (%p373_p5), %v1919_v53 }
 0x22a   : > { %1688 = vmatprep.mubr.bf16.mxu0 (%p373_p5), %v866_v4  ;;  %v852_v45 = vld [vmem:[#allocation2 + $0x10] sm:$0xff] (%p373_p5)  ;;  %v853_v5 = vld [vmem:[#allocation2 + $0x18] sm:$0xff] (%p373_p5)  ;;  %v854_v14 = vld [vmem:[#allocation2 + $0x20] sm:$0xff] (%p373_p5)  ;;  %1173 = vst [vmem:[#allocation3 + $0x20] sm:$0xff] (%p373_p5), %v1919_v53 }
 0x22b   : > { %1696 = vmatprep.mubr.bf16.mxu1 (%p373_p5), %v870_v12  ;;  %v860_v6 = vld [vmem:[#allocation2 + $0x50] sm:$0xff] (%p373_p5)  ;;  %v861_v13 = vld [vmem:[#allocation2 + $0x58] sm:$0xff] (%p373_p5)  ;;  %v862_v7 = vld [vmem:[#allocation2 + $0x60] sm:$0xff] (%p373_p5)  ;;  %v867_v47 = vpack.c.bf16 (%p373_p5), %v853_v5, %v852_v45  ;;  %1174 = vst [vmem:[#allocation3 + $0x28] sm:$0xff] (%p373_p5), %v1919_v53 }
 0x22c   : > { %1675 = vmatpush3.bf16.msra.mxu0 (%p373_p5), %v1844_v36  ;;  %1777 = vmatpush3.bf16.msra.mxu1 (%p373_p5), %v1844_v36  ;;  %v855_v46 = vld [vmem:[#allocation2 + $0x28] sm:$0xff] (%p373_p5)  ;;  %v871_v15 = vpack.c.bf16 (%p373_p5), %v861_v13, %v860_v6  ;;  %v856_v49 = vld [vmem:[#allocation2 + $0x30] sm:$0xff] (%p373_p5)  ;;  %v857_v50 = vld [vmem:[#allocation2 + $0x38] sm:$0xff] (%p373_p5)  ;;  %1175 = vst [vmem:[#allocation3 + $0x30] sm:$0xff] (%p373_p5), %v1919_v53 }
 0x22d   : > { %1676 = vmatprep.subr.bf16.mxu0 %v1845_v37  ;;  %1770 = vmatprep.subr.bf16.mxu1 %v1845_v37  ;;  %v863_v8 = vld [vmem:[#allocation2 + $0x68] sm:$0xff]  ;;  %v868_v16 = vpack.c.bf16 %v855_v46, %v854_v14  ;;  %v864_v51 = vld [vmem:[#allocation2 + $0x70] sm:$0xff]  ;;  %v865_v52 = vld [vmem:[#allocation2 + $0x78] sm:$0xff]  ;;  %v869_v9 = vpack.c.bf16 %v857_v50, %v856_v49  ;;  %1176 = vst [vmem:[#allocation3 + $0x38] sm:$0xff] %v1919_v53 }
 0x22e   : > { %v872_v48 = vpack.c.bf16 %v863_v8, %v862_v7  ;;  %v873_v10 = vpack.c.bf16 %v865_v52, %v864_v51  ;;  %v1516_v17 = vld [vmem:[%s2236_s3] ss:$0 sm:$0xff] }
 0x230   : > { %1677 = vmatpush3.bf16.msra.mxu0 %v1845_v37  ;;  %1778 = vmatpush3.bf16.msra.mxu1 %v1845_v37 }
 0x231   : > { %1678 = vmatprep.subr.bf16.mxu0 %v1846_v38  ;;  %1771 = vmatprep.subr.bf16.mxu1 %v1846_v38 }
 0x234   : > { %1679 = vmatpush3.bf16.msra.mxu0 %v1846_v38  ;;  %1779 = vmatpush3.bf16.msra.mxu1 %v1846_v38 }
 0x235   : > { %1680 = vmatprep.subr.bf16.mxu0 %v1847_v41  ;;  %1772 = vmatprep.subr.bf16.mxu1 %v1847_v41 }
 0x238   : > { %1681 = vmatpush3.bf16.msra.mxu0 %v1847_v41  ;;  %1780 = vmatpush3.bf16.msra.mxu1 %v1847_v41 }
 0x239   : > { %1682 = vmatprep.subr.bf16.mxu0 %v1848_v42  ;;  %1773 = vmatprep.subr.bf16.mxu1 %v1848_v42 }
 0x23c   : > { %1683 = vmatpush3.bf16.msra.mxu0 %v1848_v42  ;;  %1781 = vmatpush3.bf16.msra.mxu1 %v1848_v42 }
 0x23d   : > { %1684 = vmatprep.subr.bf16.mxu0 %v1849_v43  ;;  %1774 = vmatprep.subr.bf16.mxu1 %v1849_v43 }
 0x240   : > { %1685 = vmatpush3.bf16.msra.mxu0 %v1849_v43  ;;  %1782 = vmatpush3.bf16.msra.mxu1 %v1849_v43 }
 0x241   : > { %1686 = vmatprep.subr.bf16.mxu0 %v1850_v44  ;;  %1775 = vmatprep.subr.bf16.mxu1 %v1850_v44 }
 0x244   : > { %1687 = vmatpush3.bf16.msra.mxu0 %v1850_v44  ;;  %1783 = vmatpush3.bf16.msra.mxu1 %v1850_v44 }
 0x247   : > { %1689 = vmatmul.mubr.bf16.vlgmr.msra.gmra.mrb[0].mxu0 %v867_v47  ;;  %1697 = vmatmul.mubr.bf16.vlgmr.msra.gmra.mrb[0].mxu1 %v871_v15 }
 0x248   : > { %1692 = vmatprep.mubr.bf16.mxu0 %v868_v16  ;;  %1700 = vmatprep.mubr.bf16.mxu1 %v872_v48 }
 0x24f   : > { %1693 = vmatmul.mubr.bf16.gmra.mrb[4].mxu0 %v869_v9  ;;  %1701 = vmatmul.mubr.bf16.gmra.mrb[4].mxu1 %v873_v10 }
 0x31a   : > { %v1690_v18 = vpop.f32.mrb[0].mxu0  ;;  %v1698_v54 = vpop.f32.mrb[0].mxu1 }
 0x31b   : > { %v979_v55 = vpop.f32.mrb[1].mxu0  ;;  %v1011_v56 = vpop.f32.mrb[1].mxu1 }
 0x31c   : > { %v980_v57 = vadd.f32 %v1516_v17, %v979_v55  ;;  %v1691_v58 = vpop.f32.mrb[2].mxu0  ;;  %v1699_v59 = vpop.f32.mrb[2].mxu1 }
 0x31d   : > { %v982_v60 = vpop.f32.mrb[3].mxu0  ;;  %v1014_v61 = vpop.f32.mrb[3].mxu1 }
 0x31e   : > { %v1042_v62 = vmax.f32 %v980_v57, 0.0 }
 0x320   : > { %v1157_v0 = vpack.c.bf16 %v1920_v63, %v1042_v62 }
 0x322   : > { %1169 = vst [vmem:[#allocation3] sm:$0xff] %v1157_v0  ;;  %v1694_v1 = vpop.f32.mrb[4].mxu0  ;;  %v1702_v2 = vpop.f32.mrb[4].mxu1 }
 0x323   : > { %v995_v19 = vpop.f32.mrb[5].mxu0  ;;  %v1027_v20 = vpop.f32.mrb[5].mxu1 }
 0x324   : > { %v1695_v21 = vpop.f32.mrb[6].mxu0  ;;  %v1703_v22 = vpop.f32.mrb[6].mxu1 }
 0x325   : > { %v998_v23 = vpop.f32.mrb[7].mxu0  ;;  %v1030_v24 = vpop.f32.mrb[7].mxu1 }
 0x326 PF: > { %1180 = sbr.rel (!%p347_p4) target bundleno = 1099 (0x44b), region = 76  ;;  %v1851_v25 = vld [vmem:[%s2237_s4] sm:$0xff] (%p347_p4)   ;;  %v1852_v26 = vld [vmem:[%s2237_s4 + $0x8] sm:$0xff] (%p347_p4)   ;;  %v1853_v27 = vld [vmem:[%s2237_s4 + $0x10] sm:$0xff] (%p347_p4)  }
 0x327   : > { %1704 = vmatprep.subr.bf16.mxu0 (%p347_p4), %v1851_v25  ;;  %1784 = vmatprep.subr.bf16.mxu1 (%p347_p4), %v1851_v25  ;;  %v1854_v28 = vld [vmem:[%s2237_s4 + $0x18] sm:$0xff] (%p347_p4)   ;;  %v1181_v29 = vld [vmem:[#allocation2] sm:$0xff] (%p347_p4)  ;;  %v1182_v30 = vld [vmem:[#allocation2 + $0x8] sm:$0xff] (%p347_p4) }
 0x328   : > { %1705 = vmatpush3.bf16.msra.mxu0 (%p347_p4), %v1851_v25  ;;  %1792 = vmatpush3.bf16.msra.mxu1 (%p347_p4), %v1851_v25  ;;  %v1197_v31 = vpack.c.bf16 (%p347_p4), %v1182_v30, %v1181_v29  ;;  %v1189_v32 = vld [vmem:[#allocation2 + $0x40] sm:$0xff] (%p347_p4)  ;;  %v1190_v33 = vld [vmem:[#allocation2 + $0x48] sm:$0xff] (%p347_p4)  ;;  %v1857_v37 = vld [vmem:[%s2237_s4 + $0x30] sm:$0xff] (%p347_p4)  }
 0x329   : > { %1706 = vmatprep.subr.bf16.mxu0 (%p347_p4), %v1852_v26  ;;  %1785 = vmatprep.subr.bf16.mxu1 (%p347_p4), %v1852_v26  ;;  %v1855_v34 = vld [vmem:[%s2237_s4 + $0x20] sm:$0xff] (%p347_p4)   ;;  %v1201_v35 = vpack.c.bf16 (%p347_p4), %v1190_v33, %v1189_v32  ;;  %v1856_v36 = vld [vmem:[%s2237_s4 + $0x28] sm:$0xff] (%p347_p4)   ;;  %v1858_v38 = vld [vmem:[%s2237_s4 + $0x38] sm:$0xff] (%p347_p4)  }
 0x32a   : > { %1720 = vmatprep.mubr.bf16.mxu0 (%p347_p4), %v1197_v31  ;;  %v1183_v39 = vld [vmem:[#allocation2 + $0x10] sm:$0xff] (%p347_p4)  ;;  %v1184_v40 = vld [vmem:[#allocation2 + $0x18] sm:$0xff] (%p347_p4)  ;;  %v1185_v3 = vld [vmem:[#allocation2 + $0x20] sm:$0xff] (%p347_p4) }
 0x32b   : > { %1728 = vmatprep.mubr.bf16.mxu1 (%p347_p4), %v1201_v35  ;;  %v1191_v4 = vld [vmem:[#allocation2 + $0x50] sm:$0xff] (%p347_p4)  ;;  %v1192_v11 = vld [vmem:[#allocation2 + $0x58] sm:$0xff] (%p347_p4)  ;;  %v1186_v12 = vld [vmem:[#allocation2 + $0x28] sm:$0xff] (%p347_p4)  ;;  %v1198_v43 = vpack.c.bf16 (%p347_p4), %v1184_v40, %v1183_v39 }
 0x32c   : > { %1707 = vmatpush3.bf16.msra.mxu0 (%p347_p4), %v1852_v26  ;;  %1793 = vmatpush3.bf16.msra.mxu1 (%p347_p4), %v1852_v26  ;;  %v1193_v41 = vld [vmem:[#allocation2 + $0x60] sm:$0xff] (%p347_p4)  ;;  %v1194_v42 = vld [vmem:[#allocation2 + $0x68] sm:$0xff] (%p347_p4)  ;;  %v1202_v44 = vpack.c.bf16 (%p347_p4), %v1192_v11, %v1191_v4  ;;  %v1199_v45 = vpack.c.bf16 (%p347_p4), %v1186_v12, %v1185_v3  ;;  %v1187_v6 = vld [vmem:[#allocation2 + $0x30] sm:$0xff] (%p347_p4) }
 0x32d   : > { %1708 = vmatprep.subr.bf16.mxu0 %v1853_v27  ;;  %1786 = vmatprep.subr.bf16.mxu1 %v1853_v27  ;;  %v1203_v5 = vpack.c.bf16 %v1194_v42, %v1193_v41  ;;  %v1188_v13 = vld [vmem:[#allocation2 + $0x38] sm:$0xff]  ;;  %v1195_v14 = vld [vmem:[#allocation2 + $0x70] sm:$0xff]  ;;  %v1366_v29 = vld [vmem:[#allocation4] sm:$0x1] }
 0x32e   : > { %v1196_v46 = vld [vmem:[#allocation2 + $0x78] sm:$0xff]  ;;  %v1200_v7 = vpack.c.bf16 %v1188_v13, %v1187_v6 }
 0x32f   : > { %v1204_v8 = vpack.c.bf16 %v1196_v46, %v1195_v14 }
 0x330   : > { %1709 = vmatpush3.bf16.msra.mxu0 %v1853_v27  ;;  %1794 = vmatpush3.bf16.msra.mxu1 %v1853_v27 }
 0x331   : > { %1710 = vmatprep.subr.bf16.mxu0 %v1854_v28  ;;  %1787 = vmatprep.subr.bf16.mxu1 %v1854_v28 }
 0x334   : > { %1711 = vmatpush3.bf16.msra.mxu0 %v1854_v28  ;;  %1795 = vmatpush3.bf16.msra.mxu1 %v1854_v28 }
 0x335   : > { %1712 = vmatprep.subr.bf16.mxu0 %v1855_v34  ;;  %1788 = vmatprep.subr.bf16.mxu1 %v1855_v34 }
 0x338   : > { %1713 = vmatpush3.bf16.msra.mxu0 %v1855_v34  ;;  %1796 = vmatpush3.bf16.msra.mxu1 %v1855_v34 }
 0x339   : > { %1714 = vmatprep.subr.bf16.mxu0 %v1856_v36  ;;  %1789 = vmatprep.subr.bf16.mxu1 %v1856_v36 }
 0x33c   : > { %1715 = vmatpush3.bf16.msra.mxu0 %v1856_v36  ;;  %1797 = vmatpush3.bf16.msra.mxu1 %v1856_v36 }
 0x33d   : > { %1716 = vmatprep.subr.bf16.mxu0 %v1857_v37  ;;  %1790 = vmatprep.subr.bf16.mxu1 %v1857_v37 }
 0x340   : > { %1717 = vmatpush3.bf16.msra.mxu0 %v1857_v37  ;;  %1798 = vmatpush3.bf16.msra.mxu1 %v1857_v37 }
 0x341   : > { %1718 = vmatprep.subr.bf16.mxu0 %v1858_v38  ;;  %1791 = vmatprep.subr.bf16.mxu1 %v1858_v38 }
 0x344   : > { %1719 = vmatpush3.bf16.msra.mxu0 %v1858_v38  ;;  %1799 = vmatpush3.bf16.msra.mxu1 %v1858_v38 }
 0x347   : > { %1721 = vmatmul.mubr.bf16.vlgmr.msra.gmra.mrb[0].mxu0 %v1198_v43  ;;  %1729 = vmatmul.mubr.bf16.vlgmr.msra.gmra.mrb[0].mxu1 %v1202_v44 }
 0x348   : > { %1724 = vmatprep.mubr.bf16.mxu0 %v1199_v45  ;;  %1732 = vmatprep.mubr.bf16.mxu1 %v1203_v5 }
 0x34f   : > { %1725 = vmatmul.mubr.bf16.gmra.mrb[4].mxu0 %v1200_v7  ;;  %1733 = vmatmul.mubr.bf16.gmra.mrb[4].mxu1 %v1204_v8 }
 0x41a   : > { %v1722_v47 = vpop.f32.mrb[0].mxu0  ;;  %v1730_v15 = vpop.f32.mrb[0].mxu1 }
 0x41b   : > { %v1303_v16 = vpop.f32.mrb[1].mxu0  ;;  %v1335_v48 = vpop.f32.mrb[1].mxu1 }
 0x41c   : > { %v1723_v49 = vpop.f32.mrb[2].mxu0  ;;  %v1731_v50 = vpop.f32.mrb[2].mxu1 }
 0x41d   : > { %v1306_v51 = vpop.f32.mrb[3].mxu0  ;;  %v1338_v52 = vpop.f32.mrb[3].mxu1 }
 0x41e   : > { %v1367_v9 = vadd.f32 %v1306_v51, %v1303_v16 }
 0x420   : > { %v1368_v10 = vadd.f32 %v1722_v47, %v1367_v9 }
 0x422   : > { %v1726_v53 = vpop.f32.mrb[4].mxu0  ;;  %v1369_v17 = vadd.f32 %v1723_v49, %v1368_v10  ;;  %v1734_v18 = vpop.f32.mrb[4].mxu1 }
 0x423   : > { %v1319_v54 = vpop.f32.mrb[5].mxu0  ;;  %v1351_v55 = vpop.f32.mrb[5].mxu1 }
 0x424   : > { %v1370_v56 = vadd.f32 %v1369_v17, %v1319_v54  ;;  %v1727_v57 = vpop.f32.mrb[6].mxu0  ;;  %v1735_v58 = vpop.f32.mrb[6].mxu1 }
 0x425   : > { %v1322_v59 = vpop.f32.mrb[7].mxu0  ;;  %v1354_v60 = vpop.f32.mrb[7].mxu1 }
 0x426   : > { %v1371_v61 = vadd.f32 %v1370_v56, %v1322_v59 }
 0x428   : > { %v1372_v62 = vadd.f32 %v1726_v53, %v1371_v61 }
 0x42a   : > { %v1373_v63 = vadd.f32 %v1727_v57, %v1372_v62 }
 0x42c   : > { %v1374_v0 = vadd.f32 %v1373_v63, %v1335_v48 }
 0x42e   : > { %v1375_v1 = vadd.f32 %v1374_v0, %v1338_v52 }
 0x430   : > { %v1376_v2 = vadd.f32 %v1730_v15, %v1375_v1 }
 0x432   : > { %v1377_v19 = vadd.f32 %v1731_v50, %v1376_v2 }
 0x434   : > { %v1378_v20 = vadd.f32 %v1377_v19, %v1351_v55 }
 0x436   : > { %v1379_v21 = vadd.f32 %v1378_v20, %v1354_v60 }
 0x438   : > { %v1380_v22 = vadd.f32 %v1734_v18, %v1379_v21 }
 0x43a   : > { %v1381_v23 = vadd.f32 %v1735_v58, %v1380_v22 }
 0x43c   : > { %v1382_v24 = vrot.slane %v1381_v23, 4 }
 0x43e   : > { %v1383_v25 = vadd.f32 %v1382_v24, %v1381_v23 }
 0x440   : > { %v1384_v26 = vrot.slane %v1383_v25, 2 }
 0x442   : > { %v1385_v27 = vadd.f32 %v1384_v26, %v1383_v25 }
 0x444   : > { %v1386_v28 = vrot.slane %v1385_v27, 1 }
 0x446   : > { %v1387_v30 = vadd.f32 %v1386_v28, %v1385_v27 }
 0x448   : > { %v1388_v31 = vadd.f32 %v1387_v30, %v1366_v29 }
 0x44a   : > { %1389 = vst [vmem:[#allocation4] sm:$0x1] %v1388_v31 }
 0x44b PF: > { %1393 = sbr.rel (!%p347_p4) target bundleno = 1284 (0x504), region = 80  ;;  %v1396_v33 = vld [vmem:[%s2238_s5] sm:$0x1] (%p347_p4)  ;;  %vm1400_vm0 = vcmask (%p347_p4), 1040384   ;;  %v1404_v39 = vld [vmem:[#allocation5] sm:$0x1] (%p347_p4) }
 0x44c   : > { %v1398_v35 = vld [vmem:[%s2239_s6] sm:$0x1] (%p347_p4)  ;;  %vm1412_vm1 = vcmask (%p347_p4), 0  }
 0x451   : > { %v1394_v32 = vld [vmem:[#allocation4] sm:$0x1] (%p347_p4) }
 0x452   : > { %v1395_v34 = vmul.f32 0.125, %v1394_v32 }
 0x454   : > { %v1397_v36 = vadd.f32 %v1396_v33, %v1395_v34 }
 0x456   : > { %v1399_v37 = vmul.f32 %v1398_v35, %v1397_v36 }
 0x458   : > { %v1401_v38 = vsel %vm1400_vm0, %v1399_v37, 0.0 }
 0x459   : > { %1402 = vadd.xlane.f32.xlu0 %v1401_v38 }
 0x4e6   : > { %v1403_v40 = vpop.xlane.xlu0 %1402 }
 0x4e7   : > { %v1405_v3 = vadd.f32 %v1404_v39, %v1403_v40 }
 0x4e9   : > { %v1535_v4 = vmul.f32 -1.442695, %v1405_v3 }
 0x4eb   : > { %1859 = vpow2.f32 %v1535_v4 }
 0x4f5   : > { %v1860_v11 = vpop.eup %1859 }
 0x4f6   : > { %v1409_v12 = vadd.f32 1.0, %v1860_v11 }
 0x4f8   : > { %1861 = vrcp.f32 %v1409_v12 }
 0x502   : > { %v1862_v41 = vpop.eup %1861 }
 0x503   : > { %1413 = vst.msk [vmem:[#allocation6] sm:$0x1] %vm1412_vm1, %v1862_v41 }
 0x504 PF: > { %p2198_p8 = scmp.eq.s32.totalorder %s1484_s7, 1  ;;  %s1921_s25 = smov [#allocation6]  }
 0x505   : > { %s1421_s26 = sshll.u32 %s1921_s25, 4  ;;  %s1422_s26 = int_to_ptr.vmem [resolvable:$true] %s1421_s26 }
 0x506   : > { %s1863_s27 = scalar_lea.vmem %s1422_s26, 16  ;;  %s1869_s28 = scalar_lea.vmem %s1422_s26, 32 }
 0x507   : > { %p1864_p9 = scmp.ne.s32.totalorder %s1422_s26, %s1863_s27  ;;  %p1870_p12 = scmp.lt.s32.totalorder %s1422_s26, %s1422_s26 }
 0x508   : > { %p1871_p13 = scmp.lt.s32.totalorder %s1869_s28, %s1863_s27 }
 0x509   : > { %p1865_p10 = pnand %p1864_p9, %p2198_p8 }
 0x50a   : > { %p1872_p0 = por %p1871_p13, %p1870_p12 }
 0x50b   : > { %p1866_p11 = pneg %p1865_p10 }
 0x50d   : > { %p1873_p1 = pnand %p1872_p0, %p1866_p11 }
 0x50f   : > { %1876 = shalt.err (!%p1873_p1)
}
 0x510   : > { %s1877_s12 = scalar_lea.hbm %s2241_s8, 16 }
 0x511   : > { %p1878_p2 = scmp.ne.s32.totalorder %s2241_s8, %s1877_s12  ;;  %p1883_p5 = scmp.lt.u32.totalorder %s1877_s12, %s2241_s8 }
 0x513   : > { %p1879_p3 = pnand %p1878_p2, %p2198_p8 }
 0x515   : > { %p1880_p4 = pneg %p1879_p3 }
 0x517   : > { %p1885_p6 = pnand %p1883_p5, %p1880_p4 }
 0x519   : > { %1888 = shalt.err (!%p1885_p6)
}
 0x51a   : > { %1801 = dma.vmem_to_hbm [thread:$0]  (%p2198_p8), %s1422_s26, 16, %s2241_s8, [#allocation7]  }
 0x51b   : > { %1902 = dma.done.wait (%p2198_p8), [#allocation7], 16  }
 0x51c   : > { %1904 = vsyncadd (%p2198_p8), [#allocation7], 4294967280 }
 0x51d PF: > { %s21_s9 = sadd.s32 1, %s1915_s9   ;;  %s2243_s29 = smov %s1911_s30 }
 0x51e   : > { %p18_p7 = scmp.ge.s32.totalorder %s21_s9, 4   ;;  %s2244_s30 = smov %s2246_s10 }
 0x520   :  { %20 = sbr.rel (!%p18_p7) target bundleno = 5 (0x5), region = 110 }
 0x527   :  { %1434 = vsyncpa [#allocation7], 1 }
 0x528   :  { %1436 = vsyncpa [#allocation7 + $0x1], 1 }

</bundles_post_ra>
